<compile_context>
chip_gen: v6e
topology: v6e:2x2x1
jax: 0.10.0
libtpu: 0.0.40
codegen_flags: <defaults>
</compile_context>

<pallas_src>
import functools

import jax
import jax.numpy as jnp
from jax.experimental import pallas as pl
from jax.experimental.pallas import tpu as pltpu


def _cdiv(a, b):
    return -(-a // b)


def _largest_divisor_leq(n, m):
    for d in range(min(n, m), 0, -1):
        if n % d == 0:
            return d
    return 1


def _tda_clip_mean_kernel(x_ref, o_ref, acc_ref, *, max_value, inv_h, k, w):
    # x_ref : (1, TC, TH, Wk) input block in VMEM (native dtype)
    # o_ref : (1, TC, W)      output block (x.dtype), written on the last H-step
    # acc_ref: (1, TC, W) f32 running sum over the H-tile ("arbitrary") axis
    h = pl.program_id(2)

    @pl.when(h == 0)
    def _():
        acc_ref[...] = jnp.zeros_like(acc_ref)

    # Clamp in native dtype (VPU), accumulate the sub-H reduction in f32.
    clamped = jnp.clip(x_ref[...], 0.0, max_value)
    s = jnp.sum(clamped, axis=2, dtype=jnp.float32)          # (1, TC, Wk)

    # Finish the k-fold (H rows folded into lanes) in-kernel: static lane
    # slices + adds; XLU/VALU are idle in this HBM-bound kernel.
    if k > 1:
        folded = s[..., 0:w]
        for j in range(1, k):
            folded = folded + s[..., j * w:(j + 1) * w]
    else:
        folded = s
    acc_ref[...] += folded

    @pl.when(h == pl.num_programs(2) - 1)
    def _():
        o_ref[...] = (acc_ref[...] * inv_h).astype(o_ref.dtype)


def tda_clip(x, max_value, op=True, *,
             target_tile_bytes=4 * 1024 * 1024,
             small_fallback_bytes=256 * 1024,
             min_grid_steps=8,
             force_pallas=False):
    """clamp(x, 0, max_value) then mean over dim 2 (if op), else the clamp.

    x: (B, C, H, W). Returns (B, C, W) when op is truthy, else (B, C, H, W).
    """
    max_value = float(max_value)
    if not op:
        # op=None path is pure elementwise; XLA fuses it in one pass.
        return jnp.clip(x, 0.0, max_value)

    B, C, H, W = x.shape
    itemsize = x.dtype.itemsize

    # Tiny problems: Pallas dispatch + ~0.35us/step overhead dwarfs the work.
    if not force_pallas and B * C * H * W * itemsize < small_fallback_bytes:
        clamped = jnp.clip(x, 0.0, max_value)
        return jnp.mean(clamped.astype(jnp.float32), axis=2).astype(x.dtype)

    # ---- lane fold: push Wk towards 128 lanes, but keep Hk >= 8 sublanes ----
    if W >= 128 or H <= 1:
        k = 1
    else:
        k_cap = max(1, 128 // W)
        if H >= 8:
            k_cap = min(k_cap, max(1, H // 8))   # keep sublane density
        else:
            k_cap = min(k_cap, H)
        k = _largest_divisor_leq(H, k_cap)
    Hk, Wk = H // k, k * W
    xf = x.reshape(B, C, Hk, Wk)

    bytes_per_chan = Hk * Wk * itemsize          # == H * W * itemsize

    # ---- tile selection: channel tile (mult. of 8 or full C) and H tile ----
    tc_min = C if C <= 8 else 8
    th = Hk
    if tc_min * bytes_per_chan > target_tile_bytes and Hk > 1:
        # Small-C / huge-HW: tile the (folded) H axis and accumulate across it.
        tc = tc_min
        th_budget = max(1, target_tile_bytes // (tc * Wk * itemsize))
        for d in range(min(Hk, th_budget), 0, -1):
            if Hk % d == 0 and (d % 8 == 0 or d == Hk):
                th = d
                break
        # TODO(synk): mask partial H blocks so th need not divide Hk exactly.
    else:
        max_tc = max(1, target_tile_bytes // bytes_per_chan)
        if max_tc >= C:
            tc = C
        else:
            tc = min(C, max(8, (max_tc // 8) * 8))
        # Guarantee enough grid steps to double-buffer / feed both v7x cores.
        if B * _cdiv(C, tc) < min_grid_steps and C > 8:
            want_c_tiles = _cdiv(min_grid_steps, B)
            tc_for_steps = max(8, (_cdiv(C, want_c_tiles) // 8) * 8)
            tc = min(tc, tc_for_steps)

    c_tiles = _cdiv(C, tc)
    h_tiles = Hk // th

    kernel = functools.partial(_tda_clip_mean_kernel,
                               max_value=max_value, inv_h=1.0 / H, k=k, w=W)
    # TODO(synk): pass max_value as an SMEM scalar (num_scalar_prefetch=1) if it
    # must vary at runtime without recompiles.

    return pl.pallas_call(
        kernel,
        out_shape=jax.ShapeDtypeStruct((B, C, W), x.dtype),
        grid_spec=pltpu.PrefetchScalarGridSpec(
            num_scalar_prefetch=0,
            grid=(B, c_tiles, h_tiles),
            in_specs=[pl.BlockSpec((1, tc, th, Wk),
                                   lambda b, c, h: (b, c, h, 0))],
            out_specs=pl.BlockSpec((1, tc, W), lambda b, c, h: (b, c, 0)),
            scratch_shapes=[pltpu.VMEM((1, tc, W), jnp.float32)],
        ),
        compiler_params=pltpu.CompilerParams(
            dimension_semantics=("parallel", "parallel", "arbitrary"),
            vmem_limit_bytes=32 * 1024 * 1024,
        ),
    )(xf)


if __name__ == "__main__":
    key = jax.random.PRNGKey(0)
    k1, k2, k3 = jax.random.split(key, 3)
    max_value = 0.5

    # Test 1: module-sized small shapes; force the Pallas path.
    B, C, H, W = 2, 4, 16, 16
    x = jax.random.normal(k1, (B, C, H, W), dtype=jnp.float32)
    out = jax.block_until_ready(tda_clip(x, max_value, force_pallas=True))
    ref = jnp.mean(jnp.clip(x, 0.0, max_value), axis=2)
    assert out.shape == (B, C, W), out.shape
    assert out.dtype == x.dtype, out.dtype
    assert jnp.allclose(out, ref, atol=1e-6), "mismatch vs reference (small)"

    # Test 2: more channels + tiny tile budget to exercise the (B, C-tile) grid.
    B2, C2 = 2, 256
    x2 = jax.random.normal(k2, (B2, C2, H, W), dtype=jnp.float32)
    out2 = jax.block_until_ready(
        tda_clip(x2, max_value, force_pallas=True, target_tile_bytes=64 * 1024))
    ref2 = jnp.mean(jnp.clip(x2, 0.0, max_value), axis=2)
    assert out2.shape == (B2, C2, W), out2.shape
    assert jnp.allclose(out2, ref2, atol=1e-6), "mismatch vs reference (tiled)"

    # Test 3: small-C / large-HW to exercise the H-tile accumulator path.
    B3, C3, H3, W3 = 2, 4, 512, 256
    x3 = jax.random.normal(k3, (B3, C3, H3, W3), dtype=jnp.float32)
    out3 = jax.block_until_ready(
        tda_clip(x3, max_value, force_pallas=True, target_tile_bytes=256 * 1024))
    ref3 = jnp.mean(jnp.clip(x3, 0.0, max_value), axis=2)
    assert out3.shape == (B3, C3, W3), out3.shape
    assert jnp.allclose(out3, ref3, atol=1e-4), "mismatch vs reference (H-tiled)"

    # op=None path (returns the clamped tensor, shape preserved).
    outc = jax.block_until_ready(tda_clip(x, max_value, op=None))
    assert outc.shape == x.shape

    print("KERNEL_OK")
</pallas_src>

<mosaic_0001>
module attributes {stable_mosaic.version = 11 : i64} {
  func.func @_tda_clip_mean_kernel(%arg0: i32, %arg1: i32, %arg2: i32, %arg3: memref<1x4x8x32xf32, #tpu.memory_space<vmem>>, %arg4: memref<1x4x16xf32, #tpu.memory_space<vmem>>, %arg5: memref<1x4x16xf32, #tpu.memory_space<vmem>>) attributes {dimension_semantics = [#tpu.dimension_semantics<parallel>, #tpu.dimension_semantics<parallel>, #tpu.dimension_semantics<arbitrary>], iteration_bounds = array<i64: 2, 1, 1>, scalar_prefetch = 0 : i64, scratch_operands = 1 : i64, tpu.core_type = #tpu.core_type<tc>, window_params = [{transform_indices = @transform_0, window_bounds = array<i64: 1, 4, 8, 32>}, {transform_indices = @transform_1, window_bounds = array<i64: 1, 4, 16>}]} {
    %c0_i32 = arith.constant 0 : i32
    %0 = arith.cmpi eq, %arg2, %c0_i32 : i32
    %1 = arith.extui %0 : i1 to i32
    %c0_i32_0 = arith.constant 0 : i32
    %2 = arith.cmpi ne, %1, %c0_i32_0 : i32
    scf.if %2 {
      %cst_14 = arith.constant 0.000000e+00 : f32
      %18 = vector.broadcast %cst_14 : f32 to vector<1x4x16xf32>
      %c0_15 = arith.constant 0 : index
      %c0_16 = arith.constant 0 : index
      %c0_17 = arith.constant 0 : index
      %19 = vector.load %arg5[%c0_15, %c0_16, %c0_17] : memref<1x4x16xf32, #tpu.memory_space<vmem>>, vector<1x4x16xf32>
      tpu.vector_store %arg5[%c0_15, %c0_16, %c0_17], %18 {strides = array<i32>} : memref<1x4x16xf32, #tpu.memory_space<vmem>>, vector<1x4x16xf32>,
    } else {
    }
    %c0 = arith.constant 0 : index
    %c0_1 = arith.constant 0 : index
    %c0_2 = arith.constant 0 : index
    %c0_3 = arith.constant 0 : index
    %3 = vector.load %arg3[%c0, %c0_1, %c0_2, %c0_3] : memref<1x4x8x32xf32, #tpu.memory_space<vmem>>, vector<1x4x8x32xf32>
    %cst = arith.constant 0.000000e+00 : f32
    %cst_4 = arith.constant 5.000000e-01 : f32
    %4 = vector.broadcast %cst : f32 to vector<1x4x8x32xf32>
    %5 = arith.maximumf %4, %3 : vector<1x4x8x32xf32>
    %6 = vector.broadcast %cst_4 : f32 to vector<1x4x8x32xf32>
    %7 = arith.minimumf %6, %5 : vector<1x4x8x32xf32>
    %cst_5 = arith.constant dense<0.000000e+00> : vector<1x4x32xf32>
    %8 = vector.multi_reduction <add>, %7, %cst_5 [2] : vector<1x4x8x32xf32> to vector<1x4x32xf32>
    %9 = vector.extract_strided_slice %8 {offsets = [0, 0, 0], sizes = [1, 4, 16], strides = [1, 1, 1]} : vector<1x4x32xf32> to vector<1x4x16xf32>
    %10 = vector.extract_strided_slice %8 {offsets = [0, 0, 16], sizes = [1, 4, 16], strides = [1, 1, 1]} : vector<1x4x32xf32> to vector<1x4x16xf32>
    %11 = arith.addf %9, %10 : vector<1x4x16xf32>
    %c0_6 = arith.constant 0 : index
    %c0_7 = arith.constant 0 : index
    %c0_8 = arith.constant 0 : index
    %12 = vector.load %arg5[%c0_6, %c0_7, %c0_8] : memref<1x4x16xf32, #tpu.memory_space<vmem>>, vector<1x4x16xf32>
    %13 = arith.addf %12, %11 : vector<1x4x16xf32>
    %c0_9 = arith.constant 0 : index
    %c0_10 = arith.constant 0 : index
    %c0_11 = arith.constant 0 : index
    %14 = vector.load %arg5[%c0_9, %c0_10, %c0_11] : memref<1x4x16xf32, #tpu.memory_space<vmem>>, vector<1x4x16xf32>
    tpu.vector_store %arg5[%c0_9, %c0_10, %c0_11], %13 {strides = array<i32>} : memref<1x4x16xf32, #tpu.memory_space<vmem>>, vector<1x4x16xf32>,
    %c0_i32_12 = arith.constant 0 : i32
    %15 = arith.cmpi eq, %arg2, %c0_i32_12 : i32
    %16 = arith.extui %15 : i1 to i32
    %c0_i32_13 = arith.constant 0 : i32
    %17 = arith.cmpi ne, %16, %c0_i32_13 : i32
    scf.if %17 {
      %c0_14 = arith.constant 0 : index
      %c0_15 = arith.constant 0 : index
      %c0_16 = arith.constant 0 : index
      %18 = vector.load %arg5[%c0_14, %c0_15, %c0_16] : memref<1x4x16xf32, #tpu.memory_space<vmem>>, vector<1x4x16xf32>
      %cst_17 = arith.constant 6.250000e-02 : f32
      %19 = vector.broadcast %cst_17 : f32 to vector<1x4x16xf32>
      %20 = arith.mulf %18, %19 : vector<1x4x16xf32>
      %c0_18 = arith.constant 0 : index
      %c0_19 = arith.constant 0 : index
      %c0_20 = arith.constant 0 : index
      %21 = vector.load %arg4[%c0_18, %c0_19, %c0_20] : memref<1x4x16xf32, #tpu.memory_space<vmem>>, vector<1x4x16xf32>
      tpu.vector_store %arg4[%c0_18, %c0_19, %c0_20], %20 {strides = array<i32>} : memref<1x4x16xf32, #tpu.memory_space<vmem>>, vector<1x4x16xf32>,
    } else {
    }
    return
  }
  func.func @transform_0(%arg0: i32, %arg1: i32, %arg2: i32) -> (i32, i32, i32, i32) {
    %c0_i32 = arith.constant 0 : i32
    %c0_i32_0 = arith.constant 0 : i32
    return %arg0, %arg1, %arg2, %c0_i32 : i32, i32, i32, i32
  }
  func.func @transform_1(%arg0: i32, %arg1: i32, %arg2: i32) -> (i32, i32, i32) {
    %c0_i32 = arith.constant 0 : i32
    %c0_i32_0 = arith.constant 0 : i32
    return %arg0, %arg1, %c0_i32 : i32, i32, i32
  }
}

</mosaic_0001>

<bundles_post_ra>
// kernel: tpu_custom_call.1
= control target key start
LH: loop header
LB: loop body
LE: loop exit
PB: predicated region body
PF: predicated region fallthrough
CT: control target
= control target key end

     0   :  { %6 = vsyncpa [#allocation4], 0  ;;  %s699_s0 = inlined_call_operand.hbm [shape: f32[2,4,8,32], index: 0, kind: input, shape index: {}]   ;;  %s700_s1 = inlined_call_operand.hbm [shape: f32[2,4,16], index: 1, kind: output, shape index: {}]  }
   0x1   :  { %8 = vsyncpa [#allocation4 + $0x1], 0 }
   0x2   :  { %9 = vsyncpa [#allocation5], 0 }
   0x3   :  { %11 = vsyncpa [#allocation5 + $0x1], 0  ;;  %s563_s6 = smov 0   ;;  %s565_s7 = smov 0  }
   0x4   :  { %s567_s8 = smov 0   ;;  %s569_s9 = smov 0  }
   0x5   :  { %s571_s10 = smov 0   ;;  %s573_s11 = smov 0  }
   0x6 LB: > { %s356_s12 = sadd.s32 4294967295, %s545_s11   ;;  %s357_s13 = sadd.s32 4294967294, %s545_s11   ;;  %s545_s11 = sphi %s573_s11, %s17_s11   ;;  %s541_s10 = sphi %s571_s10, %s711_s10   ;;  %s537_s9 = sphi %s569_s9, %s710_s9   ;;  %s533_s8 = sphi %s567_s8, %s709_s8   ;;  %s529_s7 = sphi %s565_s7, %s708_s7   ;;  %s525_s6 = sphi %s563_s6, %s707_s6  }
   0x7   : > { %s36_s14 = sadd.s32 1, %s541_s10  ;;  %s47_s15 = sadd.s32 1, %s533_s8 }
   0x8   : > { %p38_p0 = scmp.ge.s32.totalorder %s36_s14, 2  ;;  %p54_p1 = scmp.ne.s32.totalorder %s533_s8, %s529_s7 }
   0x9   : > { %p55_p2 = scmp.eq.s32.totalorder %s545_s11, 0  ;;  %p60_p3 = scmp.ne.s32.totalorder %s529_s7, %s525_s6 }
   0xa   : > { %s713_s14 = smov (%p38_p0, %s36_s14), 0  ;;  %p61_p5 = scmp.eq.s32.totalorder %s356_s12, 0 }
   0xb   : > { %p604_p4 = por %p55_p2, %p54_p1  ;;  %s40_s17 = ssub.s32 %s541_s10, %s713_s14 }
   0xc   : > { %p86_p6 = scmp.eq.s32.totalorder %s356_s12, 1  ;;  %p45_p7 = scmp.eq.s32.totalorder %s40_s17, 0 }
   0xd   : > { %p610_p8 = por %p61_p5, %p60_p3  ;;  %p92_p10 = scmp.eq.s32.totalorder %s357_s13, 1 }
   0xe   : > { %p614_p9 = por %p86_p6, %p54_p1  ;;  %p383_p13 = scmp.lt.s32.totalorder %s545_s11, 2 }
   0xf   : > { %s619_s20 = scalar_select %p45_p7, %s533_s8, %s47_s15  }
  0x10   : > { %p621_p11 = por %p92_p10, %p60_p3  ;;  %s112_s22 = sand.u32 1, %s533_s8  }
  0x11   : > { %s360_s23 = sshll.u32 %s112_s22, 5  ;;  %s370_s24 = sshll.u32 %s541_s10, 9 }
  0x12   : > { %s125_s27 = scalar_lea.hbm %s699_s0, %s370_s24  ;;  %s116_s28 = scalar_lea.vmem [#allocation3], %s360_s23 }
  0x13   : > { %s126_s29 = sshll.u32 %s116_s28, 4  ;;  %p634_p0 = pnand %p383_p13, %p604_p4  ;;  %s127_s29 = int_to_ptr.vmem [resolvable:$true] %s126_s29 }
  0x14   : > { %p363_p1 = scmp.ge.s32.totalorder %s545_s11, 1  ;;  %s113_s2 = scalar_lea.sflag [#allocation4], %s112_s22 }
  0x15   : > { %p439_p2 = pneg %p634_p0  ;;  %s450_s3 = scalar_lea.vmem %s127_s29, 512 }
  0x16   : > { %p451_p3 = scmp.ne.s32.totalorder %s127_s29, %s450_s3  ;;  %s547_s4 = smov [#allocation3]  }
  0x17   : > { %s455_s5 = sshll.u32 %s547_s4, 4  ;;  %s456_s5 = int_to_ptr.vmem [resolvable:$false] %s455_s5 }
  0x18   : > { %p453_p5 = pnand %p451_p3, %p439_p2  ;;  %s457_s12 = scalar_lea.vmem %s456_s5, 1024 }
  0x19   : > { %p458_p7 = scmp.lt.s32.totalorder %s127_s29, %s456_s5  ;;  %p459_p10 = scmp.lt.s32.totalorder %s457_s12, %s450_s3 }
  0x1a   : > { %p454_p6 = pneg %p453_p5 }
  0x1b   : > { %p460_p12 = por %p459_p10, %p458_p7 }
  0x1d   : > { %p461_p4 = pnand %p460_p12, %p454_p6 }
  0x1f   : > { %464 = shalt.err (!%p461_p4)
}
  0x20   : > { %s548_s13 = smov 128   ;;  %s549_s15 = smov 8  }
  0x21   : > { %378 = dma.hbm_to_vmem [thread:$0]  (!%p634_p0), %s125_s27, 512, %s127_s29, %s113_s2, %s548_s13, %s548_s13, %s549_s15  }
  0x22   : > { %p134_p13 = scmp.lt.s32.totalorder %s545_s11, 3 }
  0x24   : > { %p135_p2 = pnand %p363_p1, %p134_p13 }
  0x25   : > { %s647_s16 = sand.u32 (!%p135_p2), 1, %s529_s7  }
  0x26   : > { %138 = sbr.rel (%p135_p2) target bundleno = 212 (0xd4), region = 24  ;;  %s364_s17 = sshll.u32 (!%p135_p2), %s647_s16, 5 }
  0x27   : > { %s141_s22 = scalar_lea.sflag (!%p135_p2), [#allocation4], %s647_s16  ;;  %s144_s23 = scalar_lea.vmem (!%p135_p2), [#allocation3], %s364_s17 }
  0x2b   : > { %516 = dma.done.wait (%p610_p8), %s141_s22, 512  }
  0x2c   : > { %518 = vsyncadd (%p610_p8), %s141_s22, 4294966784  ;;  %v171_v0 = vld [vmem:[%s144_s23 + $0x8] sm:$0xff]  ;;  %v170_v1 = vld [vmem:[%s144_s23] sm:$0xff]  ;;  %vm182_vm0 = vcmask 261120   ;;  %vm168_vm1 = vcmask 125952   ;;  %v550_v23 = vmov 0.0  }
  0x2d   : > { %v172_v2 = vld [vmem:[%s144_s23 + $0x10] sm:$0xff]  ;;  %v175_v3 = vmax.f32 %v171_v0, 0.0  ;;  %v174_v4 = vmax.f32 %v170_v1, 0.0  ;;  %v173_v6 = vld [vmem:[%s144_s23 + $0x18] sm:$0xff]  ;;  %169 = vst.msk [vmem:[#allocation2] sm:$0xf] %vm168_vm1, %v550_v23 }
  0x2e   : > { %v176_v5 = vmax.f32 %v172_v2, 0.0  ;;  %v177_v7 = vmax.f32 %v173_v6, 0.0  ;;  %s551_s18 = smov 112   ;;  %vm237_vm2 = vcmask 1041409   ;;  %vm240_vm3 = vcmask 1042434   ;;  %s365_s24 = sshll.u32 %s647_s16, 2 }
  0x2f   : > { %v179_v8 = vmin.f32 %v175_v3, 0.5  ;;  %v178_v9 = vmin.f32 %v174_v4, 0.5  ;;  %vm243_vm4 = vcmask 1043459   ;;  %s367_s25 = sshll.u32 %s537_s9, 6  ;;  %s162_s26 = scalar_lea.vmem [#allocation6], %s365_s24 }
  0x30   : > { %v180_v10 = vmin.f32 %v176_v5, 0.5  ;;  %v181_v11 = vmin.f32 %v177_v7, 0.5  ;;  %s270_s27 = sshll.u32 %s162_s26, 4  ;;  %s268_s30 = scalar_lea.hbm %s700_s1, %s367_s25  ;;  %s271_s27 = int_to_ptr.vmem [resolvable:$true] %s270_s27 }
  0x31   : > { %v190_v12 = vsel %vm182_vm0, %v179_v8, 0.0  ;;  %v183_v13 = vsel %vm182_vm0, %v178_v9, 0.0  ;;  %s256_s2 = scalar_lea.sflag [#allocation5], %s647_s16  ;;  %s465_s3 = scalar_lea.vmem %s271_s27, 64 }
  0x32   : > { %v197_v14 = vsel %vm182_vm0, %v180_v10, 0.0  ;;  %v191_v15 = vrot.slane %v190_v12, 4  ;;  %v184_v16 = vrot.slane %v183_v13, 4  ;;  %v204_v18 = vsel %vm182_vm0, %v181_v11, 0.0  ;;  %p466_p8 = scmp.ne.s32.totalorder %s271_s27, %s465_s3  ;;  %s552_s4 = smov [#allocation6]  }
  0x33   : > { %v198_v17 = vrot.slane %v197_v14, 4  ;;  %v205_v19 = vrot.slane %v204_v18, 4  ;;  %s469_s5 = sshll.u32 %s552_s4, 4  ;;  %s470_s5 = int_to_ptr.vmem [resolvable:$false] %s469_s5 }
  0x34   : > { %v192_v20 = vadd.f32 %v191_v15, %v190_v12  ;;  %v185_v21 = vadd.f32 %v184_v16, %v183_v13  ;;  %v231_v53 = vld [vmem:[#allocation2] sm:$0xf]  ;;  %p467_p12 = pnand %p466_p8, %p614_p9  ;;  %s471_s9 = scalar_lea.vmem %s470_s5, 128 }
  0x35   : > { %v199_v22 = vadd.f32 %v198_v17, %v197_v14  ;;  %v206_v24 = vadd.f32 %v205_v19, %v204_v18  ;;  %p472_p1 = scmp.lt.s32.totalorder %s271_s27, %s470_s5  ;;  %p473_p3 = scmp.lt.s32.totalorder %s471_s9, %s465_s3 }
  0x36   : > { %v193_v25 = vrot.slane %v192_v20, 2  ;;  %v186_v26 = vrot.slane %v185_v21, 2  ;;  %p468_p0 = pneg %p467_p12 }
  0x37   : > { %v200_v27 = vrot.slane %v199_v22, 2  ;;  %v207_v28 = vrot.slane %v206_v24, 2  ;;  %p474_p5 = por %p473_p3, %p472_p1 }
  0x38   : > { %v194_v29 = vadd.f32 %v193_v25, %v192_v20  ;;  %v187_v30 = vadd.f32 %v186_v26, %v185_v21 }
  0x39   : > { %v201_v31 = vadd.f32 %v200_v27, %v199_v22  ;;  %v208_v32 = vadd.f32 %v207_v28, %v206_v24  ;;  %p475_p6 = pnand %p474_p5, %p468_p0 }
  0x3a   : > { %v195_v33 = vrot.slane %v194_v29, 1  ;;  %v188_v34 = vrot.slane %v187_v30, 1 }
  0x3b   : > { %v202_v35 = vrot.slane %v201_v31, 1  ;;  %v209_v36 = vrot.slane %v208_v32, 1 }
  0x3c   : > { %v196_v37 = vadd.f32 %v195_v33, %v194_v29  ;;  %v189_v38 = vadd.f32 %v188_v34, %v187_v30 }
  0x3d   : > { %v203_v39 = vadd.f32 %v202_v35, %v201_v31  ;;  %v210_v40 = vadd.f32 %v209_v36, %v208_v32 }
  0x3e   : > { %217 = vrot.lane.b32.xlu0 %v196_v37, %s551_s18  ;;  %215 = vrot.lane.b32.xlu1 %v189_v38, %s551_s18 }
  0x42   : > { %219 = vrot.lane.b32.xlu0 %v203_v39, %s551_s18  ;;  %221 = vrot.lane.b32.xlu1 %v210_v40, %s551_s18 }
  0xb0   : > { %v218_v41 = vpop.permute.xlu0 %217  ;;  %v216_v42 = vpop.permute.xlu1 %215 }
  0xb1   : > { %v228_v43 = vadd.f32 %v218_v41, %v196_v37  ;;  %v227_v45 = vadd.f32 %v216_v42, %v189_v38 }
  0xb3   : > { %v236_v44 = vrot.slane %v228_v43, 7 }
  0xb4   : > { %v220_v46 = vpop.permute.xlu0 %219  ;;  %v222_v47 = vpop.permute.xlu1 %221 }
  0xb5   : > { %v229_v48 = vadd.f32 %v220_v46, %v203_v39  ;;  %v230_v49 = vadd.f32 %v222_v47, %v210_v40  ;;  %v238_v52 = vsel %vm237_vm2, %v236_v44, %v227_v45 }
  0xb7   : > { %v239_v50 = vrot.slane %v229_v48, 6  ;;  %v242_v51 = vrot.slane %v230_v49, 5 }
  0xb9   : > { %v241_v54 = vsel %vm240_vm3, %v239_v50, %v238_v52 }
  0xba   : > { %v244_v55 = vsel %vm243_vm4, %v242_v51, %v241_v54 }
  0xbb   : > { %v246_v56 = vadd.f32 %v244_v55, %v231_v53 }
  0xbd   : > { %248 = vst.msk [vmem:[#allocation2] sm:$0xf] %vm168_vm1, %v246_v56 }
  0xc4   : > { %v252_v57 = vld [vmem:[#allocation2] sm:$0xf] }
  0xc5   : > { %v253_v58 = vmul.f32 0.0625, %v252_v57 }
  0xc7   : > { %254 = vst.msk [vmem:[%s162_s26] sm:$0xf] %vm168_vm1, %v253_v58 }
  0xc8   : > { %478 = shalt.err (!%p475_p6)
}
  0xc9   : > { %s479_s12 = scalar_lea.hbm %s268_s30, 64  ;;  %s483_s16 = scalar_lea.hbm %s700_s1, 128 }
  0xca   : > { %p480_p7 = scmp.ne.s32.totalorder %s268_s30, %s479_s12  ;;  %p484_p13 = scmp.lt.s32.totalorder %s268_s30, %s700_s1 }
  0xcb   : > { %p485_p2 = scmp.lt.s32.totalorder %s483_s16, %s479_s12 }
  0xcc   : > { %p481_p10 = pnand %p480_p7, %p614_p9 }
  0xcd   : > { %p486_p8 = por %p485_p2, %p484_p13 }
  0xce   : > { %p482_p4 = pneg %p481_p10 }
  0xd0   : > { %p487_p12 = pnand %p486_p8, %p482_p4 }
  0xd2   : > { %490 = shalt.err (!%p487_p12)
}
  0xd3   : > { %373 = dma.vmem_to_hbm [thread:$0]  (%p614_p9), %s271_s27, 64, %s268_s30, %s256_s2  }
  0xd4 PF: > { %s282_s23 = sand.u32 1, %s525_s6   ;;  %p706_p0 = scmp.ge.s32.totalorder %s545_s11, 2 }
  0xd5   : > { %s283_s18 = scalar_lea.sflag [#allocation5], %s282_s23 }
  0xd6   : > { %p380_p1 = pnand %p706_p0, %p621_p11 }
  0xd8   : > { %p381_p3 = pneg %p380_p1 }
  0xda   : > { %520 = dma.done.wait (%p381_p3), %s283_s18, 64  }
  0xdb   : > { %522 = vsyncadd (%p381_p3), %s283_s18, 4294967232  ;;  %s17_s11 = sadd.s32 1, %s545_s11   ;;  %s707_s6 = smov %s529_s7 }
  0xdc   : > { %p14_p5 = scmp.ge.s32.totalorder %s17_s11, 4   ;;  %s708_s7 = smov %s533_s8 }
  0xdd   : > { %s709_s8 = smov %s619_s20  ;;  %s710_s9 = smov %s541_s10 }
  0xde   : > { %s711_s10 = smov %s713_s14  ;;  %16 = sbr.rel (!%p14_p5) target bundleno = 6 (0x6), region = 77 }
  0xe3   :  { %288 = vsyncpa [#allocation4], 1 }
  0xe4   :  { %290 = vsyncpa [#allocation4 + $0x1], 1 }
  0xe5   :  { %291 = vsyncpa [#allocation5], 1 }
  0xe6   :  { %293 = vsyncpa [#allocation5 + $0x1], 1 }

</bundles_post_ra>
